<compile_context>
chip_gen: v7x
topology: tpu7x:2x2x1
jax: 0.10.0
libtpu: 0.0.40
codegen_flags: <defaults>
</compile_context>

<pallas_src>
import functools
import math

import jax
import jax.numpy as jnp
from jax.experimental import pallas as pl
from jax.experimental.pallas import tpu as pltpu


def _round_up(x, m):
    return (x + m - 1) // m * m


def embedfc_kernel(x_ref, w1_ref, b1_ref, w2_ref, b2_ref, o_ref, *, approx_gelu):
    # Linear 1 (MXU): native-dtype operands, f32 accumulation.
    h = jnp.dot(x_ref[...], w1_ref[...], preferred_element_type=jnp.float32)
    h = h + b1_ref[...]  # b1 is pre-cast f32 (1, E) -> broadcasts over rows

    if approx_gelu:
        # tanh approximation: lowers to the EUP slot (frees VALU slots when
        # the kernel is compute-bound).  Numerics differ slightly from torch
        # default GELU.
        c = jnp.float32(math.sqrt(2.0 / math.pi))
        h = 0.5 * h * (1.0 + jnp.tanh(c * (h + jnp.float32(0.044715) * h * h * h)))
    else:
        # Exact GELU (matches torch.nn.GELU default): 0.5*h*(1+erf(h/sqrt(2))).
        h = 0.5 * h * (1.0 + jax.lax.erf(h * jnp.float32(1.0 / math.sqrt(2.0))))

    # Linear 2 (MXU).  Cast the f32 activation down to the weight dtype only
    # if needed (no-op for f32 weights, single downcast for bf16).
    y = jnp.dot(h.astype(w2_ref.dtype), w2_ref[...],
                preferred_element_type=jnp.float32)
    y = y + b2_ref[...]

    o_ref[...] = y.astype(o_ref.dtype)


def prepare_embedfc_params(w1, b1, w2, b2, *, lane=128, param_dtype=None):
    """ONE-TIME parameter prep (do not call per forward).

    Pads emb_dim up to a multiple of `lane` so the output block is lane-dense
    (unmasked vst) and the second matmul fills the MXU N dim.  Padded W1
    columns / b1 entries are zero, so GELU(0)=0 feeds zeros into W2's padded
    rows -> numerics unchanged.  Optionally casts weights to bf16 for the
    memory-bound data path (f32 accumulation is kept in-kernel).
    """
    emb_dim = w2.shape[1]
    e_p = _round_up(emb_dim, lane)
    if e_p != emb_dim:
        pad_e = e_p - emb_dim
        w1 = jnp.pad(w1, ((0, 0), (0, pad_e)))
        b1 = jnp.pad(b1, (0, pad_e))
        w2 = jnp.pad(w2, ((0, pad_e), (0, pad_e)))
        b2 = jnp.pad(b2, (0, pad_e))
    if param_dtype is not None:
        w1 = w1.astype(param_dtype)
        w2 = w2.astype(param_dtype)
    # Biases as (1, E) f32 rows, cast once here (added to f32 accumulator).
    b1_2d = b1.reshape(1, e_p).astype(jnp.float32)
    b2_2d = b2.reshape(1, e_p).astype(jnp.float32)
    return (w1, b1_2d, w2, b2_2d), emb_dim


def embed_fc(x, params, *, input_dim, emb_dim=None, row_tile=512,
             approx_gelu=False, return_padded=False):
    """Pallas implementation of EmbedFC.forward: x.view(-1, input_dim) -> MLP.

    `params` must come from prepare_embedfc_params (already lane-padded).
    """
    w1, b1_2d, w2, b2_2d = params
    e_p = w2.shape[1]
    if emb_dim is None:
        emb_dim = e_p

    x2 = x.reshape(-1, input_dim)
    n = x2.shape[0]

    # Sublane packing for the row tile: 8 for 32-bit, 16 for bf16, 32 for i8.
    packing = max(1, 4 // jnp.dtype(x.dtype).itemsize) * 8

    # Large row tile (>=512 rows reaches ~85% of HBM roofline, amortizes the
    # ~0.35us per-grid-step overhead), capped so the grid keeps >=2 iterations
    # whenever n allows it (both v7x TensorCores get work).
    tm = min(row_tile, max(packing, _round_up(pl.cdiv(n, 2), packing)))
    grid = (pl.cdiv(n, tm),)   # ragged last block; no jnp.pad of x

    x_bytes = jnp.dtype(x.dtype).itemsize
    w_bytes = jnp.dtype(w1.dtype).itemsize
    o_bytes = x_bytes

    # Explicit scoped-VMEM budget: double-buffered x/out tiles, single-
    # buffered weights/biases, plus headroom.  Capped at 64 MiB (v7x phys).
    vmem_needed = (
        2 * tm * input_dim * x_bytes
        + 2 * tm * e_p * o_bytes
        + (input_dim * e_p + e_p * e_p) * w_bytes
        + 2 * e_p * 4
    )
    vmem_limit = int(min(max(2 * vmem_needed + (4 << 20), 16 << 20), 64 << 20))

    # Advisory cost estimate for XLA scheduling around the custom call.
    flops = 2 * n * input_dim * e_p + 2 * n * e_p * e_p
    bytes_accessed = (
        n * input_dim * x_bytes
        + (input_dim * e_p + e_p * e_p) * w_bytes
        + 2 * e_p * 4
        + n * e_p * o_bytes
    )

    kern = functools.partial(embedfc_kernel, approx_gelu=approx_gelu)
    invariant = dict(pipeline_mode=pl.Buffered(1))  # grid-invariant -> 1 buffer

    out = pl.pallas_call(
        kern,
        out_shape=jax.ShapeDtypeStruct((n, e_p), x.dtype),
        grid=grid,
        in_specs=[
            pl.BlockSpec((tm, input_dim), lambda i: (i, 0)),            # x rows
            pl.BlockSpec((input_dim, e_p), lambda i: (0, 0), **invariant),  # W1
            pl.BlockSpec((1, e_p), lambda i: (0, 0), **invariant),          # b1
            pl.BlockSpec((e_p, e_p), lambda i: (0, 0), **invariant),        # W2
            pl.BlockSpec((1, e_p), lambda i: (0, 0), **invariant),          # b2
        ],
        out_specs=pl.BlockSpec((tm, e_p), lambda i: (i, 0)),
        compiler_params=pltpu.CompilerParams(
            dimension_semantics=("parallel",),
            vmem_limit_bytes=vmem_limit),
        cost_estimate=pl.CostEstimate(
            flops=flops,
            transcendentals=n * e_p,
            bytes_accessed=bytes_accessed),
    )(x2, w1, b1_2d, w2, b2_2d)

    if return_padded or e_p == emb_dim:
        return out          # (n, e_p): no extra HBM copy pass
    return out[:, :emb_dim]  # module-faithful (n, emb_dim) output


def init_embedfc_params(key, input_dim, emb_dim, dtype=jnp.float32):
    """Deterministic init mimicking torch.nn.Linear defaults (uniform +-1/sqrt(fan_in))."""
    k1, k2, k3, k4 = jax.random.split(key, 4)
    bound1 = 1.0 / math.sqrt(input_dim)
    bound2 = 1.0 / math.sqrt(emb_dim)
    # Stored transposed vs. PyTorch: (in_features, out_features).
    w1 = jax.random.uniform(k1, (input_dim, emb_dim), dtype, -bound1, bound1)
    b1 = jax.random.uniform(k2, (emb_dim,), dtype, -bound1, bound1)
    w2 = jax.random.uniform(k3, (emb_dim, emb_dim), dtype, -bound2, bound2)
    b2 = jax.random.uniform(k4, (emb_dim,), dtype, -bound2, bound2)
    return w1, b1, w2, b2


def embed_fc_ref(x, w1, b1, w2, b2, *, input_dim):
    x2 = x.reshape(-1, input_dim).astype(jnp.float32)
    h = x2 @ w1.astype(jnp.float32) + b1.astype(jnp.float32)
    h = 0.5 * h * (1.0 + jax.lax.erf(h / jnp.sqrt(jnp.float32(2.0))))
    return h @ w2.astype(jnp.float32) + b2.astype(jnp.float32)


if __name__ == "__main__":
    input_dim = 64   # = 4 * 16 (channels * features), consumed via view(-1, input_dim)
    emb_dim = 32

    key = jax.random.PRNGKey(0)
    kx, kp = jax.random.split(key)

    # Arbitrary-rank input; forward flattens to (-1, input_dim). (2, 4, 16) -> (2, 64).
    x = jax.random.normal(kx, (2, 4, 16), dtype=jnp.float32)
    w1, b1, w2, b2 = init_embedfc_params(kp, input_dim, emb_dim)

    # One-time parameter prep: lane-pad emb_dim (and optionally cast to bf16).
    params, _ = prepare_embedfc_params(w1, b1, w2, b2)

    out = embed_fc(x, params, input_dim=input_dim, emb_dim=emb_dim)
    out = jax.block_until_ready(out)

    ref = embed_fc_ref(x, w1, b1, w2, b2, input_dim=input_dim)
    assert out.shape == (2, emb_dim), out.shape
    assert jnp.allclose(out, ref, atol=1e-5, rtol=1e-5), "mismatch vs reference"

    print("KERNEL_OK")
</pallas_src>

<mosaic_0001>
module attributes {stable_mosaic.version = 11 : i64} {
  func.func @embedfc_kernel(%arg0: i32, %arg1: memref<8x64xf32, #tpu.memory_space<vmem>>, %arg2: memref<64x128xf32, #tpu.memory_space<vmem>>, %arg3: memref<1x128xf32, #tpu.memory_space<vmem>>, %arg4: memref<128x128xf32, #tpu.memory_space<vmem>>, %arg5: memref<1x128xf32, #tpu.memory_space<vmem>>, %arg6: memref<8x128xf32, #tpu.memory_space<vmem>>) attributes {dimension_semantics = [#tpu.dimension_semantics<parallel>], iteration_bounds = array<i64: 1>, scalar_prefetch = 0 : i64, scratch_operands = 0 : i64, tpu.core_type = #tpu.core_type<tc>, window_params = [{transform_indices = @transform_0, window_bounds = array<i64: 8, 64>}, {pipeline_mode = #tpu.pipeline_mode<synchronous>, transform_indices = @transform_1, window_bounds = array<i64: 64, 128>}, {pipeline_mode = #tpu.pipeline_mode<synchronous>, transform_indices = @transform_2, window_bounds = array<i64: 1, 128>}, {pipeline_mode = #tpu.pipeline_mode<synchronous>, transform_indices = @transform_3, window_bounds = array<i64: 128, 128>}, {pipeline_mode = #tpu.pipeline_mode<synchronous>, transform_indices = @transform_4, window_bounds = array<i64: 1, 128>}, {transform_indices = @transform_5, window_bounds = array<i64: 8, 128>}]} {
    %c0 = arith.constant 0 : index
    %c0_0 = arith.constant 0 : index
    %0 = vector.load %arg1[%c0, %c0_0] : memref<8x64xf32, #tpu.memory_space<vmem>>, vector<8x64xf32>
    %c0_1 = arith.constant 0 : index
    %c0_2 = arith.constant 0 : index
    %1 = vector.load %arg2[%c0_1, %c0_2] : memref<64x128xf32, #tpu.memory_space<vmem>>, vector<64x128xf32>
    %cst = arith.constant dense<0.000000e+00> : vector<8x128xf32>
    %2 = tpu.matmul %0, %1, %cst {dimension_numbers = #tpu.dot_dimension_numbers<[1], [0], [0], [1], [0, 0, 1, 1], [], []>} : vector<8x64xf32>, vector<64x128xf32>, vector<8x128xf32> -> vector<8x128xf32>
    %c0_3 = arith.constant 0 : index
    %c0_4 = arith.constant 0 : index
    %3 = vector.load %arg3[%c0_3, %c0_4] : memref<1x128xf32, #tpu.memory_space<vmem>>, vector<1x128xf32>
    %4 = vector.broadcast %3 : vector<1x128xf32> to vector<8x128xf32>
    %5 = arith.addf %2, %4 : vector<8x128xf32>
    %cst_5 = arith.constant 5.000000e-01 : f32
    %6 = vector.broadcast %cst_5 : f32 to vector<8x128xf32>
    %7 = arith.mulf %6, %5 : vector<8x128xf32>
    %cst_6 = arith.constant 0.707106769 : f32
    %8 = vector.broadcast %cst_6 : f32 to vector<8x128xf32>
    %9 = arith.mulf %5, %8 : vector<8x128xf32>
    %10 = math.erf %9 : vector<8x128xf32>
    %cst_7 = arith.constant 1.000000e+00 : f32
    %11 = vector.broadcast %cst_7 : f32 to vector<8x128xf32>
    %12 = arith.addf %11, %10 : vector<8x128xf32>
    %13 = arith.mulf %7, %12 : vector<8x128xf32>
    %c0_8 = arith.constant 0 : index
    %c0_9 = arith.constant 0 : index
    %14 = vector.load %arg4[%c0_8, %c0_9] : memref<128x128xf32, #tpu.memory_space<vmem>>, vector<128x128xf32>
    %cst_10 = arith.constant dense<0.000000e+00> : vector<8x128xf32>
    %15 = tpu.matmul %13, %14, %cst_10 {dimension_numbers = #tpu.dot_dimension_numbers<[1], [0], [0], [1], [0, 0, 1, 1], [], []>} : vector<8x128xf32>, vector<128x128xf32>, vector<8x128xf32> -> vector<8x128xf32>
    %c0_11 = arith.constant 0 : index
    %c0_12 = arith.constant 0 : index
    %16 = vector.load %arg5[%c0_11, %c0_12] : memref<1x128xf32, #tpu.memory_space<vmem>>, vector<1x128xf32>
    %17 = vector.broadcast %16 : vector<1x128xf32> to vector<8x128xf32>
    %18 = arith.addf %15, %17 : vector<8x128xf32>
    %c0_13 = arith.constant 0 : index
    %c0_14 = arith.constant 0 : index
    %19 = vector.load %arg6[%c0_13, %c0_14] : memref<8x128xf32, #tpu.memory_space<vmem>>, vector<8x128xf32>
    tpu.vector_store %arg6[%c0_13, %c0_14], %18 {strides = array<i32>} : memref<8x128xf32, #tpu.memory_space<vmem>>, vector<8x128xf32>,
    return
  }
  func.func @transform_0(%arg0: i32) -> (i32, i32) {
    %c0_i32 = arith.constant 0 : i32
    %c0_i32_0 = arith.constant 0 : i32
    return %arg0, %c0_i32 : i32, i32
  }
  func.func @transform_1(%arg0: i32) -> (i32, i32) {
    %c0_i32 = arith.constant 0 : i32
    %c0_i32_0 = arith.constant 0 : i32
    %c0_i32_1 = arith.constant 0 : i32
    return %c0_i32, %c0_i32_0 : i32, i32
  }
  func.func @transform_2(%arg0: i32) -> (i32, i32) {
    %c0_i32 = arith.constant 0 : i32
    %c0_i32_0 = arith.constant 0 : i32
    %c0_i32_1 = arith.constant 0 : i32
    return %c0_i32, %c0_i32_0 : i32, i32
  }
  func.func @transform_3(%arg0: i32) -> (i32, i32) {
    %c0_i32 = arith.constant 0 : i32
    %c0_i32_0 = arith.constant 0 : i32
    %c0_i32_1 = arith.constant 0 : i32
    return %c0_i32, %c0_i32_0 : i32, i32
  }
  func.func @transform_4(%arg0: i32) -> (i32, i32) {
    %c0_i32 = arith.constant 0 : i32
    %c0_i32_0 = arith.constant 0 : i32
    %c0_i32_1 = arith.constant 0 : i32
    return %c0_i32, %c0_i32_0 : i32, i32
  }
  func.func @transform_5(%arg0: i32) -> (i32, i32) {
    %c0_i32 = arith.constant 0 : i32
    %c0_i32_0 = arith.constant 0 : i32
    return %arg0, %c0_i32 : i32, i32
  }
}

</mosaic_0001>

<bundles_post_ra>
// kernel: tpu_custom_call.1
= control target key start
LH: loop header
LB: loop body
LE: loop exit
PB: predicated region body
PF: predicated region fallthrough
CT: control target
= control target key end

     0   :  { %10 = vsyncpa [#allocation3], 0  ;;  %s602_s0 = inlined_call_operand.hbm [shape: f32[2,64], index: 0, kind: input, shape index: {}]   ;;  %s603_s1 = inlined_call_operand.hbm [shape: f32[64,128], index: 1, kind: input, shape index: {}]   ;;  %s604_s2 = inlined_call_operand.vmem [shape: f32[1,128], index: 2, kind: input, shape index: {}]   ;;  %s605_s3 = inlined_call_operand.hbm [shape: f32[128,128], index: 3, kind: input, shape index: {}]   ;;  %s606_s4 = inlined_call_operand.vmem [shape: f32[1,128], index: 4, kind: input, shape index: {}]   ;;  %s607_s5 = inlined_call_operand.hbm [shape: f32[2,128], index: 5, kind: output, shape index: {}]  }
   0x1   :  { %11 = vsyncpa [#allocation6], 0 }
   0x2   :  { %12 = vsyncpa [#allocation4], 0 }
   0x3   :  { %17 = vsyncadd [#allocation3], 96  ;;  %s495_s18 = smov [#allocation5]   ;;  %s401_s22 = scalar_lea.hbm %s603_s1, 1024 }
   0x4   :  { %s30_s19 = sshll.u32 %s495_s18, 4  ;;  %p402_p0 = scmp.ne.s32.totalorder %s603_s1, %s401_s22  ;;  %s31_s19 = int_to_ptr.vmem [resolvable:$true] %s30_s19 }
   0x5   :  { %p405_p1 = scmp.lt.u32.totalorder %s401_s22, %s603_s1 }
   0x7   :  { %p407_p2 = pnand %p405_p1, %p402_p0 }
   0x9   :  { %410 = shalt.err (!%p407_p2)
}
   0xa   :  { %s411_s27 = scalar_lea.vmem %s31_s19, 1024  ;;  %p416_p4 = scmp.lt.s32.totalorder %s31_s19, %s31_s19 }
   0xb   :  { %p412_p3 = scmp.ne.s32.totalorder %s31_s19, %s411_s27  ;;  %p417_p5 = scmp.lt.s32.totalorder %s411_s27, %s411_s27 }
   0xd   :  { %p418_p6 = por %p417_p5, %p416_p4 }
   0xf   :  { %p419_p7 = pnand %p418_p6, %p412_p3 }
  0x11   :  { %422 = shalt.err (!%p419_p7)
}
  0x12   :  { %s496_s28 = smov 128   ;;  %s497_s29 = smov 8  }
  0x13   :  { %36 = dma.hbm_to_vmem [thread:$0]  %s603_s1, 1024, %s31_s19, [#allocation6], %s496_s28, %s496_s28, %s497_s29  }
  0x14   :  { %s498_s7 = smov [#allocation2]   ;;  %s423_s11 = scalar_lea.hbm %s602_s0, 32 }
  0x15   :  { %s18_s8 = sshll.u32 %s498_s7, 4  ;;  %p424_p8 = scmp.ne.s32.totalorder %s602_s0, %s423_s11  ;;  %s19_s8 = int_to_ptr.vmem [resolvable:$true] %s18_s8 }
  0x16   :  { %p427_p9 = scmp.lt.u32.totalorder %s423_s11, %s602_s0 }
  0x18   :  { %p429_p10 = pnand %p427_p9, %p424_p8 }
  0x1a   :  { %432 = shalt.err (!%p429_p10)
}
  0x1b   :  { %s433_s16 = scalar_lea.vmem %s19_s8, 32  ;;  %s437_s1 = scalar_lea.vmem %s19_s8, 128 }
  0x1c   :  { %p434_p11 = scmp.ne.s32.totalorder %s19_s8, %s433_s16  ;;  %p438_p12 = scmp.lt.s32.totalorder %s19_s8, %s19_s8 }
  0x1d   :  { %p439_p13 = scmp.lt.s32.totalorder %s437_s1, %s433_s16 }
  0x1f   :  { %p440_p0 = por %p439_p13, %p438_p12 }
  0x21   :  { %p441_p1 = pnand %p440_p0, %p434_p11 }
  0x23   :  { %444 = shalt.err (!%p441_p1)
}
  0x24   :  { %s499_s17 = smov 32   ;;  %s500_s18 = smov 2  }
  0x25   :  { %24 = dma.hbm_to_vmem [thread:$0]  %s602_s0, 32, %s19_s8, [#allocation3], %s499_s17, %s499_s17, %s500_s18  }
  0x26   :  { %s501_s21 = smov [#allocation7]   ;;  %s445_s25 = scalar_lea.hbm %s605_s3, 2048 }
  0x27   :  { %s44_s22 = sshll.u32 %s501_s21, 4  ;;  %p446_p2 = scmp.ne.s32.totalorder %s605_s3, %s445_s25  ;;  %s45_s22 = int_to_ptr.vmem [resolvable:$true] %s44_s22 }
  0x28   :  { %p449_p3 = scmp.lt.u32.totalorder %s445_s25, %s605_s3 }
  0x2a   :  { %p451_p4 = pnand %p449_p3, %p446_p2 }
  0x2c   :  { %454 = shalt.err (!%p451_p4)
}
  0x2d   :  { %s455_s7 = scalar_lea.vmem %s45_s22, 2048  ;;  %p460_p6 = scmp.lt.s32.totalorder %s45_s22, %s45_s22 }
  0x2e   :  { %p456_p5 = scmp.ne.s32.totalorder %s45_s22, %s455_s7  ;;  %p461_p7 = scmp.lt.s32.totalorder %s455_s7, %s455_s7 }
  0x30   :  { %p462_p8 = por %p461_p7, %p460_p6 }
  0x32   :  { %p463_p9 = pnand %p462_p8, %p456_p5 }
  0x34   :  { %466 = shalt.err (!%p463_p9)
}
  0x35   :  { %50 = dma.hbm_to_vmem [thread:$0]  %s605_s3, 2048, %s45_s22, [#allocation6], %s496_s28, %s496_s28, %s497_s29  }
  0x36   :  { %489 = dma.done.wait [#allocation3], 128  }
  0x37   :  { %490 = vsyncadd [#allocation3], 4294967168 }
  0x38   :  { %491 = dma.done.wait [#allocation6], 3072  }
  0x39   :  { %492 = vsyncadd [#allocation6], 4294964224  ;;  %v502_v0 = vmov 0.0|0.0   ;;  %vm503_vm0 = vmmov 0   ;;  %v504_v1 = vmov 0.0   ;;  %v63_v2 = vld [vmem:[#allocation5] sm:$0xff] }
  0x3a   :  { %352 = vmatprep.subr.bf16.mxu0 %v502_v0  ;;  %314 = vmatprep.mubr.msk.f32.mxu0 %vm503_vm0, %v504_v1  ;;  %v64_v3 = vld [vmem:[#allocation5 + $0x8] sm:$0xff]  ;;  %v65_v4 = vld [vmem:[#allocation5 + $0x10] sm:$0xff]  ;;  %v66_v6 = vld [vmem:[#allocation5 + $0x18] sm:$0xff]  ;;  %vm78_vm1 = vcmask 523264  }
  0x3b   :  { %364 = vmatprep.subr.bf16.mxu1 %v502_v0  ;;  %349 = vmatprep.mubr.msk.f32.mxu1 %vm503_vm0, %v504_v1  ;;  %v353_v5 = vpack.c.bf16 %v64_v3, %v63_v2  ;;  %v356_v7 = vpack.c.bf16 %v66_v6, %v65_v4  ;;  %v157_v8 = vld [vmem:[#allocation7] sm:$0xff]  ;;  %v158_v9 = vld [vmem:[#allocation7 + $0x8] sm:$0xff]  ;;  %v159_v10 = vld [vmem:[#allocation7 + $0x10] sm:$0xff] }
  0x3c   :  { %v67_v11 = vld [vmem:[#allocation5 + $0x20] sm:$0xff]  ;;  %v68_v12 = vld [vmem:[#allocation5 + $0x28] sm:$0xff]  ;;  %v365_v13 = vpack.c.bf16 %v158_v9, %v157_v8  ;;  %v160_v14 = vld [vmem:[#allocation7 + $0x18] sm:$0xff] }
  0x3d   :  { %354 = vmatpush3.bf16.msra.mxu0 %v353_v5  ;;  %v368_v15 = vpack.c.bf16 %v160_v14, %v159_v10  ;;  %v359_v16 = vpack.c.bf16 %v68_v12, %v67_v11  ;;  %v161_v17 = vld [vmem:[#allocation7 + $0x20] sm:$0xff]  ;;  %v162_v18 = vld [vmem:[#allocation7 + $0x28] sm:$0xff]  ;;  %v69_v19 = vld [vmem:[#allocation5 + $0x30] sm:$0xff] }
  0x3e   :  { %355 = vmatprep.subr.bf16.mxu0 %v502_v0  ;;  %366 = vmatpush3.bf16.msra.mxu1 %v365_v13  ;;  %v70_v20 = vld [vmem:[#allocation5 + $0x38] sm:$0xff]  ;;  %v371_v21 = vpack.c.bf16 %v162_v18, %v161_v17  ;;  %v163_v24 = vld [vmem:[#allocation7 + $0x30] sm:$0xff]  ;;  %v165_v27 = vld [vmem:[#allocation7 + $0x40] sm:$0xff] }
  0x3f   :  { %367 = vmatprep.subr.bf16.mxu1 %v502_v0  ;;  %v362_v22 = vpack.c.bf16 %v70_v20, %v69_v19  ;;  %v62_v23 = vld [vmem:[#allocation2] sm:$0xff]  ;;  %v166_v28 = vld [vmem:[#allocation7 + $0x48] sm:$0xff]  ;;  %v167_v30 = vld [vmem:[#allocation7 + $0x50] sm:$0xff] }
  0x40   :  { %v164_v25 = vld [vmem:[#allocation7 + $0x38] sm:$0xff]  ;;  %v377_v29 = vpack.c.bf16 %v166_v28, %v165_v27  ;;  %v169_v33 = vld [vmem:[#allocation7 + $0x60] sm:$0xff]  ;;  %v170_v34 = vld [vmem:[#allocation7 + $0x68] sm:$0xff] }
  0x41   :  { %357 = vmatpush3.bf16.msra.mxu0 %v356_v7  ;;  %v374_v26 = vpack.c.bf16 %v164_v25, %v163_v24  ;;  %v168_v31 = vld [vmem:[#allocation7 + $0x58] sm:$0xff]  ;;  %v383_v35 = vpack.c.bf16 %v170_v34, %v169_v33  ;;  %v171_v36 = vld [vmem:[#allocation7 + $0x70] sm:$0xff] }
  0x42   :  { %358 = vmatprep.subr.bf16.mxu0 %v502_v0  ;;  %369 = vmatpush3.bf16.msra.mxu1 %v368_v15  ;;  %v380_v32 = vpack.c.bf16 %v168_v31, %v167_v30  ;;  %v172_v37 = vld [vmem:[#allocation7 + $0x78] sm:$0xff] }
  0x43   :  { %370 = vmatprep.subr.bf16.mxu1 %v502_v0  ;;  %v386_v38 = vpack.c.bf16 %v172_v37, %v171_v36  ;;  %v269_v39 = vld [vmem:[%s604_s2] ss:$0 sm:$0xff] }
  0x44   :  { %v271_v48 = vld [vmem:[%s606_s4] ss:$0 sm:$0xff] }
  0x45   :  { %360 = vmatpush3.bf16.msra.mxu0 %v359_v16 }
  0x46   :  { %361 = vmatprep.subr.bf16.mxu0 %v502_v0  ;;  %372 = vmatpush3.bf16.msra.mxu1 %v371_v21 }
  0x47   :  { %373 = vmatprep.subr.bf16.mxu1 %v502_v0 }
  0x49   :  { %363 = vmatpush3.bf16.msra.mxu0 %v362_v22 }
  0x4a   :  { %375 = vmatpush3.bf16.msra.mxu1 %v374_v26 }
  0x4b   :  { %376 = vmatprep.subr.bf16.mxu1 %v502_v0 }
  0x4c   :  { %315 = vmatmul.mubr.msk.f32.vlgmr.msra.gmra.mrb[0].mxu0 %vm78_vm1, %v62_v23 }
  0x4e   :  { %378 = vmatpush3.bf16.msra.mxu1 %v377_v29 }
  0x4f   :  { %379 = vmatprep.subr.bf16.mxu1 %v502_v0 }
  0x52   :  { %381 = vmatpush3.bf16.msra.mxu1 %v380_v32 }
  0x53   :  { %382 = vmatprep.subr.bf16.mxu1 %v502_v0 }
  0x56   :  { %384 = vmatpush3.bf16.msra.mxu1 %v383_v35 }
  0x57   :  { %385 = vmatprep.subr.bf16.mxu1 %v502_v0 }
  0x5a   :  { %387 = vmatpush3.bf16.msra.mxu1 %v386_v38 }
 0x11f   :  { %v148_v40 = vpop.f32.mrb[0].mxu0 }
 0x120   :  { %v149_v41 = vadd.f32 %v269_v39, %v148_v40  ;;  %v316_v42 = vpop.f32.mrb[1].mxu0 }
 0x122   :  { %v153_v43 = vmul.f32 0.70710677, %v149_v41  ;;  %v152_v45 = vmul.f32 0.5, %v149_v41 }
 0x124   :  { %399 = verf.f32 %v153_v43 }
 0x12e   :  { %v400_v44 = vpop.eup %399 }
 0x12f   :  { %v155_v46 = vadd.f32 1.0, %v400_v44 }
 0x131   :  { %v156_v47 = vmul.f32 %v155_v46, %v152_v45 }
 0x133   :  { %350 = vmatmul.mubr.f32.vlgmr.msra.gmra.mrb[0].mxu1 %v156_v47 }
 0x206   :  { %v246_v49 = vpop.f32.mrb[0].mxu1 }
 0x207   :  { %v247_v50 = vadd.f32 %v271_v48, %v246_v49  ;;  %v351_v51 = vpop.f32.mrb[1].mxu1 }
 0x209   :  { %250 = vst [vmem:[#allocation8] sm:$0xff] %v247_v50 }
 0x20a   :  { %255 = vsyncadd [#allocation4], 96  ;;  %s505_s2 = smov [#allocation8]  }
 0x20b   :  { %s256_s10 = sshll.u32 %s505_s2, 4  ;;  %s257_s10 = int_to_ptr.vmem [resolvable:$true] %s256_s10 }
 0x20c   :  { %s467_s11 = scalar_lea.vmem %s257_s10, 32  ;;  %s471_s12 = scalar_lea.vmem %s257_s10, 128 }
 0x20d   :  { %p468_p10 = scmp.ne.s32.totalorder %s257_s10, %s467_s11  ;;  %p472_p11 = scmp.lt.s32.totalorder %s257_s10, %s257_s10 }
 0x20e   :  { %p473_p12 = scmp.lt.s32.totalorder %s471_s12, %s467_s11 }
 0x210   :  { %p474_p13 = por %p473_p12, %p472_p11 }
 0x212   :  { %p475_p0 = pnand %p474_p13, %p468_p10 }
 0x214   :  { %478 = shalt.err (!%p475_p0)
}
 0x215   :  { %s479_s4 = scalar_lea.hbm %s607_s5, 32 }
 0x216   :  { %p480_p1 = scmp.ne.s32.totalorder %s607_s5, %s479_s4  ;;  %p483_p2 = scmp.lt.u32.totalorder %s479_s4, %s607_s5 }
 0x218   :  { %p485_p3 = pnand %p483_p2, %p480_p1 }
 0x21a   :  { %488 = shalt.err (!%p485_p3)
}
 0x21b   :  { %262 = dma.vmem_to_hbm [thread:$0]  %s257_s10, 32, %s607_s5, [#allocation4], %s499_s17, %s499_s17, %s500_s18  }
 0x21c   :  { %493 = dma.done.wait [#allocation4], 128  }
 0x21d   :  { %494 = vsyncadd [#allocation4], 4294967168 }
 0x21e   :  { %266 = vsyncpa [#allocation3], 1 }
 0x21f   :  { %267 = vsyncpa [#allocation6], 1 }
 0x220   :  { %268 = vsyncpa [#allocation4], 1 }

</bundles_post_ra>
